<compile_context>
chip_gen: v7x
topology: tpu7x:2x2x1
jax: 0.10.0
libtpu: 0.0.40
codegen_flags: <defaults>
</compile_context>

<pallas_src>
import functools

import jax
import jax.numpy as jnp
from jax import lax
from jax.experimental import pallas as pl
from jax.experimental.pallas import tpu as pltpu

_LANES = 128
_SUBLANES = 8
_MAX_UNROLLED_SLABS = 128            # cap on statically-unrolled 128-lane slabs per block
_BYTE_BUDGET = 8 * 1024 * 1024       # ~8 MiB of input per grid step
_VMEM_LIMIT = 32 * 1024 * 1024       # 2x8MiB input + output blocks fits on v5e/v6e/v7x


def _round_up(x, m):
    return ((x + m - 1) // m) * m


def _fold_slabs(x_ref, o_ref, *, n_full, tail_cols):
    """Fold `n_full` full 128-lane slabs (plus an optional masked partial slab)
    of the current block into the resident (tile_rows, 128) output block using
    pure element-wise (VPU) maximums. All slices are static and lane-aligned."""
    acc = o_ref[...]
    for j in range(n_full):                               # unrolled at trace time
        acc = jnp.maximum(acc, x_ref[:, j * _LANES:(j + 1) * _LANES])
    if tail_cols:                                         # static: last spatial tile only
        off = n_full * _LANES
        slab = x_ref[:, off:off + _LANES]
        lane = lax.broadcasted_iota(jnp.int32, (1, _LANES), 1)   # single hoisted iota
        slab = jnp.where(lane < tail_cols, slab, jnp.array(-jnp.inf, slab.dtype))
        acc = jnp.maximum(acc, slab)
    o_ref[...] = acc


def _global_max_kernel(x_ref, o_ref, *, true_s, tile_s):
    """Streaming max over the spatial (last) axis of a (tile_rows, tile_s) block.

    Grid axis 0: row tiles      ('parallel').
    Grid axis 1: spatial tiles  (reduction, 'arbitrary') — folded directly into
                 the lane-dense (tile_rows, 128) output block (resident in VMEM
                 across the reduction axis; no scratch accumulator needed).
    """
    k = pl.program_id(1)
    last = pl.num_programs(1) - 1

    @pl.when(k == 0)
    def _():
        o_ref[...] = jnp.full(o_ref.shape, -jnp.inf, dtype=o_ref.dtype)

    n_slabs = tile_s // _LANES
    rem = true_s % tile_s            # static: valid columns in the last spatial tile

    if rem == 0:
        # Every spatial tile is fully in-bounds — single unmasked path.
        _fold_slabs(x_ref, o_ref, n_full=n_slabs, tail_cols=0)
    else:
        @pl.when(k != last)
        def _():
            _fold_slabs(x_ref, o_ref, n_full=n_slabs, tail_cols=0)

        @pl.when(k == last)
        def _():
            # Only read the in-bounds slabs; mask just the one partial slab.
            _fold_slabs(x_ref, o_ref, n_full=rem // _LANES, tail_cols=rem % _LANES)


def global_max_pool(x, *, max_tile_rows=256, byte_budget=_BYTE_BUDGET):
    """x: (N, C, D, H, W) float array -> (N, C) max over spatial dims [2, 3, 4]."""
    assert jnp.issubdtype(x.dtype, jnp.floating) and x.dtype.itemsize <= 4, (
        "real float32/bfloat16/float16 only (float64/complex unsupported on TPU)")
    N, C, D, H, W = x.shape
    S = D * H * W
    NC = N * C
    itemsize = x.dtype.itemsize

    # (N, C, D, H, W) -> (NC, S): dim collapse only, no HBM copy.
    x2d = x.reshape(NC, S)

    # --- Row tiling: sublane-aligned, capped at 256 to keep the accumulator
    # register-resident; guarantee >= 2 row tiles when possible (v7x megacore).
    row_align = 16 if itemsize == 2 else _SUBLANES
    tile_rows = min(max_tile_rows, _round_up(NC, row_align))
    if pl.cdiv(NC, tile_rows) < 2 and NC > row_align:
        tile_rows = _round_up(pl.cdiv(NC, 2), row_align)

    # --- Spatial tiling: byte-budgeted (~8 MiB of input per grid step),
    # lane(128)-aligned, capped so the statically-unrolled slab loop stays sane.
    s_cap = _round_up(S, _LANES)
    budget_s = byte_budget // (tile_rows * itemsize)
    tile_s = min(budget_s, _MAX_UNROLLED_SLABS * _LANES, s_cap)
    tile_s = max(_LANES, (tile_s // _LANES) * _LANES)

    grid = (pl.cdiv(NC, tile_rows), pl.cdiv(S, tile_s))

    kernel = functools.partial(_global_max_kernel, true_s=S, tile_s=tile_s)

    # Lane-dense (NC, 128) partial maxima; final 128-wide reduce done in JAX.
    partials = pl.pallas_call(
        kernel,
        out_shape=jax.ShapeDtypeStruct((NC, _LANES), x.dtype),
        grid_spec=pltpu.PrefetchScalarGridSpec(
            num_scalar_prefetch=0,
            grid=grid,
            in_specs=[pl.BlockSpec((tile_rows, tile_s), lambda i, k: (i, k))],
            out_specs=pl.BlockSpec((tile_rows, _LANES), lambda i, k: (i, 0)),
        ),
        compiler_params=pltpu.CompilerParams(
            dimension_semantics=("parallel", "arbitrary"),
            vmem_limit_bytes=_VMEM_LIMIT,
        ),
        cost_estimate=pl.CostEstimate(
            flops=NC * S,
            transcendentals=0,
            bytes_accessed=NC * S * itemsize + NC * _LANES * itemsize,
        ),
    )(x2d)

    return jnp.max(partials, axis=-1).reshape(N, C)


if __name__ == "__main__":
    key = jax.random.PRNGKey(0)

    # Case 1: aligned shapes (no tail masking).
    N, C, D, H, W = 2, 4, 4, 8, 16
    x = jax.random.normal(key, (N, C, D, H, W), dtype=jnp.float32)
    out = jax.block_until_ready(global_max_pool(x))
    ref = jnp.max(x, axis=(2, 3, 4))
    assert out.shape == (N, C), out.shape
    assert jnp.array_equal(out, ref), "mismatch vs reference (aligned case)"

    # Case 2: unaligned rows (NC=6) and spatial tail (S=105) exercise the
    # pl.when-gated tail mask and partial-block edge handling.
    key2 = jax.random.PRNGKey(0)
    N2, C2, D2, H2, W2 = 3, 2, 3, 5, 7
    x2 = jax.random.normal(key2, (N2, C2, D2, H2, W2), dtype=jnp.float32)
    out2 = jax.block_until_ready(global_max_pool(x2))
    ref2 = jnp.max(x2, axis=(2, 3, 4))
    assert out2.shape == (N2, C2), out2.shape
    assert jnp.array_equal(out2, ref2), "mismatch vs reference (unaligned case)"

    # Case 3: bf16 input exercises native-dtype (non-f32) accumulation.
    x3 = jax.random.normal(key, (N, C, D, H, W), dtype=jnp.bfloat16)
    out3 = jax.block_until_ready(global_max_pool(x3))
    ref3 = jnp.max(x3, axis=(2, 3, 4))
    assert out3.shape == (N, C), out3.shape
    assert jnp.array_equal(out3, ref3), "mismatch vs reference (bf16 case)"

    print("KERNEL_OK")
</pallas_src>

<mosaic_0001>
module attributes {stable_mosaic.version = 11 : i64} {
  func.func @_global_max_kernel(%arg0: i32, %arg1: i32, %arg2: memref<8x512xf32, #tpu.memory_space<vmem>>, %arg3: memref<8x128xf32, #tpu.memory_space<vmem>>) attributes {dimension_semantics = [#tpu.dimension_semantics<parallel>, #tpu.dimension_semantics<arbitrary>], iteration_bounds = array<i64: 1, 1>, scalar_prefetch = 0 : i64, scratch_operands = 0 : i64, tpu.core_type = #tpu.core_type<tc>, window_params = [{transform_indices = @transform_0, window_bounds = array<i64: 8, 512>}, {transform_indices = @transform_1, window_bounds = array<i64: 8, 128>}]} {
    %c0_i32 = arith.constant 0 : i32
    %0 = arith.cmpi eq, %arg1, %c0_i32 : i32
    %1 = arith.extui %0 : i1 to i32
    %c0_i32_0 = arith.constant 0 : i32
    %2 = arith.cmpi ne, %1, %c0_i32_0 : i32
    scf.if %2 {
      %cst = arith.constant 0xFF800000 : f32
      %13 = vector.broadcast %cst : f32 to vector<8x128xf32>
      %c0_9 = arith.constant 0 : index
      %c0_10 = arith.constant 0 : index
      %14 = vector.load %arg3[%c0_9, %c0_10] : memref<8x128xf32, #tpu.memory_space<vmem>>, vector<8x128xf32>
      tpu.vector_store %arg3[%c0_9, %c0_10], %13 {strides = array<i32>} : memref<8x128xf32, #tpu.memory_space<vmem>>, vector<8x128xf32>,
    } else {
    }
    %c0 = arith.constant 0 : index
    %c0_1 = arith.constant 0 : index
    %3 = vector.load %arg3[%c0, %c0_1] : memref<8x128xf32, #tpu.memory_space<vmem>>, vector<8x128xf32>
    %c0_2 = arith.constant 0 : index
    %c0_3 = arith.constant 0 : index
    %4 = vector.load %arg2[%c0_2, %c0_3] : memref<8x512xf32, #tpu.memory_space<vmem>>, vector<8x128xf32>
    %5 = arith.maximumf %3, %4 : vector<8x128xf32>
    %c0_4 = arith.constant 0 : index
    %c128 = arith.constant 128 : index
    %6 = vector.load %arg2[%c0_4, %c128] : memref<8x512xf32, #tpu.memory_space<vmem>>, vector<8x128xf32>
    %7 = arith.maximumf %5, %6 : vector<8x128xf32>
    %c0_5 = arith.constant 0 : index
    %c256 = arith.constant 256 : index
    %8 = vector.load %arg2[%c0_5, %c256] : memref<8x512xf32, #tpu.memory_space<vmem>>, vector<8x128xf32>
    %9 = arith.maximumf %7, %8 : vector<8x128xf32>
    %c0_6 = arith.constant 0 : index
    %c384 = arith.constant 384 : index
    %10 = vector.load %arg2[%c0_6, %c384] : memref<8x512xf32, #tpu.memory_space<vmem>>, vector<8x128xf32>
    %11 = arith.maximumf %9, %10 : vector<8x128xf32>
    %c0_7 = arith.constant 0 : index
    %c0_8 = arith.constant 0 : index
    %12 = vector.load %arg3[%c0_7, %c0_8] : memref<8x128xf32, #tpu.memory_space<vmem>>, vector<8x128xf32>
    tpu.vector_store %arg3[%c0_7, %c0_8], %11 {strides = array<i32>} : memref<8x128xf32, #tpu.memory_space<vmem>>, vector<8x128xf32>,
    return
  }
  func.func @transform_0(%arg0: i32, %arg1: i32) -> (i32, i32) {
    %c0_i32 = arith.constant 0 : i32
    return %arg0, %arg1 : i32, i32
  }
  func.func @transform_1(%arg0: i32, %arg1: i32) -> (i32, i32) {
    %c0_i32 = arith.constant 0 : i32
    %c0_i32_0 = arith.constant 0 : i32
    return %arg0, %c0_i32 : i32, i32
  }
}

</mosaic_0001>

<bundles_post_ra>
// kernel: tpu_custom_call.1
= control target key start
LH: loop header
LB: loop body
LE: loop exit
PB: predicated region body
PF: predicated region fallthrough
CT: control target
= control target key end

     0   :  { %6 = vsyncpa [#allocation3], 0  ;;  %s138_s0 = inlined_call_operand.hbm [shape: f32[8,512], index: 0, kind: input, shape index: {}]   ;;  %s139_s1 = inlined_call_operand.hbm [shape: f32[8,128], index: 1, kind: output, shape index: {}]  }
   0x1   :  { %7 = vsyncpa [#allocation4], 0  ;;  %s102_s6 = smov [#allocation2]   ;;  %s54_s10 = scalar_lea.hbm %s138_s0, 512 }
   0x2   :  { %s14_s7 = sshll.u32 %s102_s6, 4  ;;  %p55_p0 = scmp.ne.s32.totalorder %s138_s0, %s54_s10  ;;  %s15_s7 = int_to_ptr.vmem [resolvable:$true] %s14_s7 }
   0x3   :  { %p58_p1 = scmp.lt.u32.totalorder %s54_s10, %s138_s0 }
   0x5   :  { %p60_p2 = pnand %p58_p1, %p55_p0 }
   0x7   :  { %63 = shalt.err (!%p60_p2)
}
   0x8   :  { %s64_s15 = scalar_lea.vmem %s15_s7, 512  ;;  %p69_p4 = scmp.lt.s32.totalorder %s15_s7, %s15_s7 }
   0x9   :  { %p65_p3 = scmp.ne.s32.totalorder %s15_s7, %s64_s15  ;;  %p70_p5 = scmp.lt.s32.totalorder %s64_s15, %s64_s15 }
   0xb   :  { %p71_p6 = por %p70_p5, %p69_p4 }
   0xd   :  { %p72_p7 = pnand %p71_p6, %p65_p3 }
   0xf   :  { %75 = shalt.err (!%p72_p7)
}
  0x10   :  { %17 = dma.hbm_to_vmem [thread:$0]  %s138_s0, 512, %s15_s7, [#allocation3]  }
  0x11   :  { %98 = dma.done.wait [#allocation3], 512  }
  0x12   :  { %99 = vsyncadd [#allocation3], 4294966784  ;;  %v27_v0 = vld [vmem:[#allocation2] sm:$0xff]  ;;  %v29_v1 = vld [vmem:[#allocation2 + $0x8] sm:$0xff]  ;;  %s103_s18 = smov [#allocation5]  }
  0x13   :  { %v31_v2 = vld [vmem:[#allocation2 + $0x10] sm:$0xff]  ;;  %v30_v3 = vmax.f32 %v27_v0, %v29_v1  ;;  %v33_v4 = vld [vmem:[#allocation2 + $0x18] sm:$0xff]  ;;  %s42_s19 = sshll.u32 %s103_s18, 4  ;;  %s43_s19 = int_to_ptr.vmem [resolvable:$true] %s42_s19 }
  0x14   :  { %s76_s20 = scalar_lea.vmem %s43_s19, 128  ;;  %p81_p9 = scmp.lt.s32.totalorder %s43_s19, %s43_s19 }
  0x15   :  { %v32_v5 = vmax.f32 %v30_v3, %v31_v2  ;;  %p77_p8 = scmp.ne.s32.totalorder %s43_s19, %s76_s20  ;;  %p82_p10 = scmp.lt.s32.totalorder %s76_s20, %s76_s20 }
  0x17   :  { %v34_v6 = vmax.f32 %v32_v5, %v33_v4  ;;  %p83_p11 = por %p82_p10, %p81_p9 }
  0x19   :  { %35 = vst [vmem:[#allocation5] sm:$0xff] %v34_v6  ;;  %p84_p12 = pnand %p83_p11, %p77_p8 }
  0x1b   :  { %87 = shalt.err (!%p84_p12)
}
  0x1c   :  { %s88_s22 = scalar_lea.hbm %s139_s1, 128 }
  0x1d   :  { %p89_p13 = scmp.ne.s32.totalorder %s139_s1, %s88_s22  ;;  %p92_p0 = scmp.lt.u32.totalorder %s88_s22, %s139_s1 }
  0x1f   :  { %p94_p1 = pnand %p92_p0, %p89_p13 }
  0x21   :  { %97 = shalt.err (!%p94_p1)
}
  0x22   :  { %45 = dma.vmem_to_hbm [thread:$0]  %s43_s19, 128, %s139_s1, [#allocation4]  }
  0x23   :  { %100 = dma.done.wait [#allocation4], 128  }
  0x24   :  { %101 = vsyncadd [#allocation4], 4294967168 }
  0x25   :  { %49 = vsyncpa [#allocation3], 1 }
  0x26   :  { %50 = vsyncpa [#allocation4], 1 }

</bundles_post_ra>
